<compile_context>
chip_gen: v7x
topology: tpu7x:2x2x1
jax: 0.10.0
libtpu: 0.0.40
codegen_flags: <defaults>
</compile_context>

<pallas_src>
import math
from functools import partial

import jax
import jax.numpy as jnp
from jax import lax
from jax.experimental import pallas as pl
from jax.experimental.pallas import tpu as pltpu

BATCH = 2
NUM_HEADS = 8
SEQ = 16                     # must equal BATCH * NUM_HEADS (see note above)
EMB = 128
HEAD_DIM = EMB // NUM_HEADS  # 16


def _repeat_rows(t, reps):
    """(S, E) -> (S*reps, E) with row c = t[c // reps].  Lowers to a sublane
    broadcast + trivial collapse reshape (the source minor tile is a full (8,128))."""
    s, e = t.shape
    return jnp.broadcast_to(t[:, None, :], (s, reps, e)).reshape(s * reps, e)


# ----------------------------------------------------------------------------
# Fused kernel: one invocation handles QKV projection + packed multi-head
# attention + head merge for BOTH batches.
#   x_ref    : (B*S, E)  bf16  input embeddings, batches stacked along rows
#   w_ref    : (E, 3E)   bf16  [wq/sqrt(D) | wk | wv]  (scale pre-folded into wq)
#   bias_ref : (S, E)    f32   packed additive mask bias: [i, j*H+h] = bias(i, j)
#   o_ref    : (B*S, E)  f32   attention output, batches stacked along rows
# ----------------------------------------------------------------------------
def _attention_kernel(x_ref, w_ref, bias_ref, o_ref, *, num_heads):
    H = num_heads
    S, E = bias_ref.shape
    B = x_ref.shape[0] // S

    # ---- ONE wide bf16 MXU matmul for Q, K, V of both batches (M = B*S = 32) ----
    qkv = jnp.dot(x_ref[...], w_ref[...],
                  preferred_element_type=jnp.float32)            # (B*S, 3E) f32

    # ---- per-call constants (hoisted out of the batch loop) ----------------
    # Head-match matrix: hm[c, e] = 1 iff packed column c (= key*H + head) and
    # embedding lane e (head = e % H) belong to the same head.
    head_c = lax.broadcasted_iota(jnp.int32, (E, E), 0) % H
    head_e = lax.broadcasted_iota(jnp.int32, (E, E), 1) % H
    hm_bool = head_c == head_e                                   # (E, E)
    hm_f32 = hm_bool.astype(jnp.float32)                         # doubles as group-sum matrix
    bias = bias_ref[...]                                         # (S, E) f32

    for b in range(B):  # static, B == 2 — fully unrolled
        r0 = b * S
        q = qkv[r0:r0 + S, 0 * E:1 * E]                          # (S, E) f32, pre-scaled
        k = qkv[r0:r0 + S, 1 * E:2 * E]
        v = qkv[r0:r0 + S, 2 * E:3 * E]

        # Packed selection matrices: row c carries head (c % H) of key (c // H);
        # all other lanes are zeroed, so one matmul computes every head at once.
        k_sel = jnp.where(hm_bool, _repeat_rows(k, H), 0.0).astype(jnp.bfloat16)
        v_sel = jnp.where(hm_bool, _repeat_rows(v, H), 0.0).astype(jnp.bfloat16)

        # Scores for ALL heads in ONE bf16 MXU pass:
        #   s[i, j*H + h] = sum_{e: e%H==h} q_scaled[i, e] * k[j, e]
        s = lax.dot_general(q.astype(jnp.bfloat16), k_sel,
                            dimension_numbers=(((1,), (1,)), ((), ())),
                            preferred_element_type=jnp.float32)  # (S, E) f32
        s = s + bias                                             # packed mask bias

        # Softmax over the keys of each head (= stride-H lane group), done once on
        # the full (S, 128) slab:
        #  * the row-global max is a valid stabiliser (constant within every group);
        #  * per-group sums for every lane via one small f32 matmul with hm_f32.
        m = jnp.max(s, axis=-1, keepdims=True)                   # (S, 1)
        p = jnp.exp(s - m)                                       # (S, E) f32
        l = jnp.dot(p, hm_f32, preferred_element_type=jnp.float32)  # (S, E) group sums
        pn = (p / l).astype(jnp.bfloat16)

        # PV for ALL heads in ONE bf16 MXU pass; this lands directly in the
        # reference's interleaved output layout out[i, d*H + h].
        out_b = jnp.dot(pn, v_sel, preferred_element_type=jnp.float32)  # (S, E) f32
        o_ref[pl.ds(r0, S), :] = out_b                           # unmasked lane-dense store


# ----------------------------------------------------------------------------
# Wrapper: weight prep (concat + fold 1/sqrt(D) + bf16 cast) and mask-bias
# construction at trace time, one single-step pallas_call.
# ----------------------------------------------------------------------------
@jax.jit
def attention_forward(input_embeddings, token_attention_masks, wq, wk, wv):
    B, S, E = input_embeddings.shape
    H = NUM_HEADS
    D = E // H
    # The reference module's mask broadcast only type-checks when S == B*H.
    assert S == B * H, "reference mask broadcast requires seq_length == batch*num_heads"

    # bf16 MXU operands; 1/sqrt(D) folded into the query weights (exact: power of 2).
    w_cat = jnp.concatenate([wq * (1.0 / math.sqrt(D)), wk, wv],
                            axis=1).astype(jnp.bfloat16)          # (E, 3E)
    x2d = input_embeddings.reshape(B * S, E).astype(jnp.bfloat16)  # (B*S, E)

    # Packed additive mask bias, hoisted out of the kernel (identical for both batches):
    #   bias_bs[b, j]     = -1000 if mask[b, j] == 0 else 0
    #   mask_qk[i, j]     = bias_bs[i // H, j]       (the reference's (q,k) broadcast)
    #   bias_packed[i, c] = mask_qk[i, c // H]       (packed lane c = key*H + head)
    bias_bs = jnp.where(token_attention_masks == 0, -1000.0, 0.0).astype(jnp.float32)
    mask_qk = jnp.repeat(bias_bs, H, axis=0)                      # (B*H, S) == (S, S)
    bias_packed = jnp.repeat(mask_qk, H, axis=1)                  # (S, E), lane-dense

    # VMEM footprint: x 8 KB + W 96 KB + bias 8 KB + out 16 KB (+ tiny scratch) —
    # trivially fits every generation incl. v7x's 64 MiB; single step, no pipelining.
    out2d = pl.pallas_call(
        partial(_attention_kernel, num_heads=H),
        grid=(1,),
        in_specs=[
            pl.BlockSpec((B * S, E), lambda i: (0, 0)),   # x: both batches, resident
            pl.BlockSpec((E, 3 * E), lambda i: (0, 0)),   # fused bf16 weights, resident
            pl.BlockSpec((S, E), lambda i: (0, 0)),       # packed mask bias, resident
        ],
        out_specs=pl.BlockSpec((B * S, E), lambda i: (0, 0)),
        out_shape=jax.ShapeDtypeStruct((B * S, E), jnp.float32),
        compiler_params=pltpu.CompilerParams(
            dimension_semantics=("arbitrary",),           # single fused step (v5e/v6e best;
        ),                                                # re-measure a 2-way grid on v7x)
    )(x2d, w_cat, bias_packed)
    return out2d.reshape(B, S, E)


# ----------------------------------------------------------------------------
# Pure-JAX reference (mirrors the PyTorch code) using the SAME operand-precision
# recipe as the kernel (bf16 matmul operands, f32 accumulation / f32 softmax).
# ----------------------------------------------------------------------------
def reference_forward(x, mask, wq, wk, wv):
    B, S, E = x.shape
    H, D = NUM_HEADS, EMB // NUM_HEADS
    bf, f32 = jnp.bfloat16, jnp.float32

    xb = x.astype(bf)
    q = jnp.dot(xb, (wq * (1.0 / math.sqrt(D))).astype(bf), preferred_element_type=f32)
    k = jnp.dot(xb, wk.astype(bf), preferred_element_type=f32)
    v = jnp.dot(xb, wv.astype(bf), preferred_element_type=f32)

    def split(t):  # (B,S,E) -> (B*H, S, D); head h = lane e % H, feature d = e // H
        return jnp.transpose(t.reshape(B, S, D, H), (0, 3, 1, 2)).reshape(B * H, S, D)

    qh, kh, vh = split(q), split(k), split(v)
    scores = jnp.einsum("bqd,bkd->bqk", qh.astype(bf), kh.astype(bf),
                        preferred_element_type=f32)               # (B*H, S, S)
    bias = jnp.where(mask == 0, -1000.0, 0.0).astype(f32)         # (B, S)
    mask_bh = jnp.repeat(bias, H, axis=0)                         # (B*H, S)
    scores = scores + mask_bh   # same (query,key)-indexed broadcast as the PyTorch code
    p = jax.nn.softmax(scores, axis=-1)
    out = jnp.einsum("bqk,bkd->bqd", p.astype(bf), vh.astype(bf),
                     preferred_element_type=f32)
    out = jnp.transpose(out.reshape(B, H, S, D), (0, 2, 3, 1))
    return out.reshape(B, S, D * H)


if __name__ == "__main__":
    key = jax.random.PRNGKey(0)
    k_x, k_q, k_k, k_v = jax.random.split(key, 4)

    # Deterministic synthetic inputs.  Weights mimic torch.rand (uniform [0,1));
    # embeddings are scaled to a realistic magnitude so the attention logits stay in
    # a numerically well-conditioned range for the bf16-operand check.
    x = jax.random.normal(k_x, (BATCH, SEQ, EMB), dtype=jnp.float32) * 0.1
    wq = jax.random.uniform(k_q, (EMB, EMB), dtype=jnp.float32)
    wk = jax.random.uniform(k_k, (EMB, EMB), dtype=jnp.float32)
    wv = jax.random.uniform(k_v, (EMB, EMB), dtype=jnp.float32)

    # attention masks: first sequence padded after position 12, second fully valid
    mask = jnp.ones((BATCH, SEQ), dtype=jnp.int32)
    mask = mask.at[0, 12:].set(0)

    out = attention_forward(x, mask, wq, wk, wv)
    out = jax.block_until_ready(out)
    assert out.shape == (BATCH, SEQ, EMB)

    ref = reference_forward(x, mask, wq, wk, wv)
    # bf16 matmul operands on both sides -> expected agreement ~1e-3; 2e-2 leaves margin.
    assert jnp.allclose(out, ref, rtol=2e-2, atol=2e-2), "Pallas output mismatch vs reference"

    print("KERNEL_OK")
</pallas_src>

<mosaic_0001>
module attributes {stable_mosaic.version = 11 : i64} {
  func.func @_attention_kernel(%arg0: i32, %arg1: memref<32x128xbf16, #tpu.memory_space<vmem>>, %arg2: memref<128x384xbf16, #tpu.memory_space<vmem>>, %arg3: memref<16x128xf32, #tpu.memory_space<vmem>>, %arg4: memref<32x128xf32, #tpu.memory_space<vmem>>) attributes {dimension_semantics = [#tpu.dimension_semantics<arbitrary>], iteration_bounds = array<i64: 1>, scalar_prefetch = 0 : i64, scratch_operands = 0 : i64, tpu.core_type = #tpu.core_type<tc>, window_params = [{pipeline_mode = #tpu.pipeline_mode<synchronous>, transform_indices = @transform_0, window_bounds = array<i64: 32, 128>}, {pipeline_mode = #tpu.pipeline_mode<synchronous>, transform_indices = @transform_1, window_bounds = array<i64: 128, 384>}, {pipeline_mode = #tpu.pipeline_mode<synchronous>, transform_indices = @transform_2, window_bounds = array<i64: 16, 128>}, {pipeline_mode = #tpu.pipeline_mode<synchronous>, transform_indices = @transform_3, window_bounds = array<i64: 32, 128>}]} {
    %c0 = arith.constant 0 : index
    %c0_0 = arith.constant 0 : index
    %0 = vector.load %arg1[%c0, %c0_0] : memref<32x128xbf16, #tpu.memory_space<vmem>>, vector<32x128xbf16>
    %c0_1 = arith.constant 0 : index
    %c0_2 = arith.constant 0 : index
    %1 = vector.load %arg2[%c0_1, %c0_2] : memref<128x384xbf16, #tpu.memory_space<vmem>>, vector<128x384xbf16>
    %cst = arith.constant dense<0.000000e+00> : vector<32x384xf32>
    %2 = tpu.matmul %0, %1, %cst {dimension_numbers = #tpu.dot_dimension_numbers<[1], [0], [0], [1], [0, 0, 1, 1], [], []>} : vector<32x128xbf16>, vector<128x384xbf16>, vector<32x384xf32> -> vector<32x384xf32>
    %3 = tpu.iota {dimensions = array<i32: 0>} : vector<128x128xi32>
    %c8_i32 = arith.constant 8 : i32
    %c0_i32 = arith.constant 0 : i32
    %4 = arith.cmpi eq, %c8_i32, %c0_i32 : i32
    %c1_i32 = arith.constant 1 : i32
    %5 = arith.select %4, %c1_i32, %c8_i32 : i32
    %6 = vector.broadcast %5 : i32 to vector<128x128xi32>
    %7 = arith.remsi %3, %6 : vector<128x128xi32>
    %c0_i32_3 = arith.constant 0 : i32
    %8 = vector.broadcast %c0_i32_3 : i32 to vector<128x128xi32>
    %9 = arith.cmpi ne, %7, %8 : vector<128x128xi32>
    %c0_i32_4 = arith.constant 0 : i32
    %10 = vector.broadcast %c0_i32_4 : i32 to vector<128x128xi32>
    %11 = arith.cmpi slt, %7, %10 : vector<128x128xi32>
    %c0_i32_5 = arith.constant 0 : i32
    %12 = arith.cmpi slt, %5, %c0_i32_5 : i32
    %13 = vector.broadcast %12 : i1 to vector<128x128xi1>
    %14 = vector.broadcast %13 : vector<128x128xi1> to vector<128x128xi1>
    %15 = arith.xori %11, %14 : vector<128x128xi1>
    %16 = arith.andi %15, %9 : vector<128x128xi1>
    %17 = vector.broadcast %5 : i32 to vector<128x128xi32>
    %18 = arith.addi %7, %17 : vector<128x128xi32>
    %19 = arith.select %16, %18, %7 : vector<128x128xi1>, vector<128x128xi32>
    %20 = tpu.iota {dimensions = array<i32: 1>} : vector<128x128xi32>
    %c8_i32_6 = arith.constant 8 : i32
    %c0_i32_7 = arith.constant 0 : i32
    %21 = arith.cmpi eq, %c8_i32_6, %c0_i32_7 : i32
    %c1_i32_8 = arith.constant 1 : i32
    %22 = arith.select %21, %c1_i32_8, %c8_i32_6 : i32
    %23 = vector.broadcast %22 : i32 to vector<128x128xi32>
    %24 = arith.remsi %20, %23 : vector<128x128xi32>
    %c0_i32_9 = arith.constant 0 : i32
    %25 = vector.broadcast %c0_i32_9 : i32 to vector<128x128xi32>
    %26 = arith.cmpi ne, %24, %25 : vector<128x128xi32>
    %c0_i32_10 = arith.constant 0 : i32
    %27 = vector.broadcast %c0_i32_10 : i32 to vector<128x128xi32>
    %28 = arith.cmpi slt, %24, %27 : vector<128x128xi32>
    %c0_i32_11 = arith.constant 0 : i32
    %29 = arith.cmpi slt, %22, %c0_i32_11 : i32
    %30 = vector.broadcast %29 : i1 to vector<128x128xi1>
    %31 = vector.broadcast %30 : vector<128x128xi1> to vector<128x128xi1>
    %32 = arith.xori %28, %31 : vector<128x128xi1>
    %33 = arith.andi %32, %26 : vector<128x128xi1>
    %34 = vector.broadcast %22 : i32 to vector<128x128xi32>
    %35 = arith.addi %24, %34 : vector<128x128xi32>
    %36 = arith.select %33, %35, %24 : vector<128x128xi1>, vector<128x128xi32>
    %37 = arith.cmpi eq, %19, %36 : vector<128x128xi32>
    %38 = arith.extui %37 : vector<128x128xi1> to vector<128x128xi32>
    %39 = arith.sitofp %38 : vector<128x128xi32> to vector<128x128xf32>
    %c0_12 = arith.constant 0 : index
    %c0_13 = arith.constant 0 : index
    %40 = vector.load %arg3[%c0_12, %c0_13] : memref<16x128xf32, #tpu.memory_space<vmem>>, vector<16x128xf32>
    %41 = vector.extract_strided_slice %2 {offsets = [0, 0], sizes = [16, 128], strides = [1, 1]} : vector<32x384xf32> to vector<16x128xf32>
    %42 = vector.extract_strided_slice %2 {offsets = [0, 128], sizes = [16, 128], strides = [1, 1]} : vector<32x384xf32> to vector<16x128xf32>
    %43 = vector.extract_strided_slice %2 {offsets = [0, 256], sizes = [16, 128], strides = [1, 1]} : vector<32x384xf32> to vector<16x128xf32>
    %44 = vector.shape_cast %42 : vector<16x128xf32> to vector<16x1x128xf32>
    %45 = vector.shape_cast %44 : vector<16x1x128xf32> to vector<16x1x128xf32>
    %46 = vector.broadcast %45 : vector<16x1x128xf32> to vector<16x8x128xf32>
    %47 = vector.shape_cast %46 : vector<16x8x128xf32> to vector<128x128xf32>
    %cst_14 = arith.constant 0.000000e+00 : f32
    %48 = vector.broadcast %cst_14 : f32 to vector<128x128xf32>
    %49 = arith.select %37, %47, %48 : vector<128x128xi1>, vector<128x128xf32>
    %50 = arith.truncf %49 : vector<128x128xf32> to vector<128x128xbf16>
    %51 = vector.shape_cast %43 : vector<16x128xf32> to vector<16x1x128xf32>
    %52 = vector.shape_cast %51 : vector<16x1x128xf32> to vector<16x1x128xf32>
    %53 = vector.broadcast %52 : vector<16x1x128xf32> to vector<16x8x128xf32>
    %54 = vector.shape_cast %53 : vector<16x8x128xf32> to vector<128x128xf32>
    %cst_15 = arith.constant 0.000000e+00 : f32
    %55 = vector.broadcast %cst_15 : f32 to vector<128x128xf32>
    %56 = arith.select %37, %54, %55 : vector<128x128xi1>, vector<128x128xf32>
    %57 = arith.truncf %56 : vector<128x128xf32> to vector<128x128xbf16>
    %58 = arith.truncf %41 : vector<16x128xf32> to vector<16x128xbf16>
    %cst_16 = arith.constant dense<0.000000e+00> : vector<16x128xf32>
    %59 = tpu.matmul %58, %50, %cst_16 {dimension_numbers = #tpu.dot_dimension_numbers<[1], [1], [0], [0], [0, 0, 1, 0], [], []>} : vector<16x128xbf16>, vector<128x128xbf16>, vector<16x128xf32> -> vector<16x128xf32>
    %60 = arith.addf %59, %40 : vector<16x128xf32>
    %cst_17 = arith.constant dense<0xFF800000> : vector<16xf32>
    %61 = vector.multi_reduction <maximumf>, %60, %cst_17 [1] : vector<16x128xf32> to vector<16xf32>
    %62 = vector.shape_cast %61 : vector<16xf32> to vector<16x1xf32>
    %63 = vector.broadcast %62 : vector<16x1xf32> to vector<16x128xf32>
    %64 = arith.subf %60, %63 : vector<16x128xf32>
    %65 = math.exp %64 : vector<16x128xf32>
    %cst_18 = arith.constant dense<0.000000e+00> : vector<16x128xf32>
    %66 = tpu.matmul %65, %39, %cst_18 {dimension_numbers = #tpu.dot_dimension_numbers<[1], [0], [0], [1], [0, 0, 1, 1], [], []>} : vector<16x128xf32>, vector<128x128xf32>, vector<16x128xf32> -> vector<16x128xf32>
    %67 = arith.divf %65, %66 : vector<16x128xf32>
    %68 = arith.truncf %67 : vector<16x128xf32> to vector<16x128xbf16>
    %cst_19 = arith.constant dense<0.000000e+00> : vector<16x128xf32>
    %69 = tpu.matmul %68, %57, %cst_19 {dimension_numbers = #tpu.dot_dimension_numbers<[1], [0], [0], [1], [0, 0, 1, 1], [], []>} : vector<16x128xbf16>, vector<128x128xbf16>, vector<16x128xf32> -> vector<16x128xf32>
    %c0_20 = arith.constant 0 : index
    %c0_21 = arith.constant 0 : index
    %70 = vector.load %arg4[%c0_20, %c0_21] : memref<32x128xf32, #tpu.memory_space<vmem>>, vector<16x128xf32>
    tpu.vector_store %arg4[%c0_20, %c0_21], %69 {strides = array<i32>} : memref<32x128xf32, #tpu.memory_space<vmem>>, vector<16x128xf32>,
    %71 = vector.extract_strided_slice %2 {offsets = [16, 0], sizes = [16, 128], strides = [1, 1]} : vector<32x384xf32> to vector<16x128xf32>
    %72 = vector.extract_strided_slice %2 {offsets = [16, 128], sizes = [16, 128], strides = [1, 1]} : vector<32x384xf32> to vector<16x128xf32>
    %73 = vector.extract_strided_slice %2 {offsets = [16, 256], sizes = [16, 128], strides = [1, 1]} : vector<32x384xf32> to vector<16x128xf32>
    %74 = vector.shape_cast %72 : vector<16x128xf32> to vector<16x1x128xf32>
    %75 = vector.shape_cast %74 : vector<16x1x128xf32> to vector<16x1x128xf32>
    %76 = vector.broadcast %75 : vector<16x1x128xf32> to vector<16x8x128xf32>
    %77 = vector.shape_cast %76 : vector<16x8x128xf32> to vector<128x128xf32>
    %cst_22 = arith.constant 0.000000e+00 : f32
    %78 = vector.broadcast %cst_22 : f32 to vector<128x128xf32>
    %79 = arith.select %37, %77, %78 : vector<128x128xi1>, vector<128x128xf32>
    %80 = arith.truncf %79 : vector<128x128xf32> to vector<128x128xbf16>
    %81 = vector.shape_cast %73 : vector<16x128xf32> to vector<16x1x128xf32>
    %82 = vector.shape_cast %81 : vector<16x1x128xf32> to vector<16x1x128xf32>
    %83 = vector.broadcast %82 : vector<16x1x128xf32> to vector<16x8x128xf32>
    %84 = vector.shape_cast %83 : vector<16x8x128xf32> to vector<128x128xf32>
    %cst_23 = arith.constant 0.000000e+00 : f32
    %85 = vector.broadcast %cst_23 : f32 to vector<128x128xf32>
    %86 = arith.select %37, %84, %85 : vector<128x128xi1>, vector<128x128xf32>
    %87 = arith.truncf %86 : vector<128x128xf32> to vector<128x128xbf16>
    %88 = arith.truncf %71 : vector<16x128xf32> to vector<16x128xbf16>
    %cst_24 = arith.constant dense<0.000000e+00> : vector<16x128xf32>
    %89 = tpu.matmul %88, %80, %cst_24 {dimension_numbers = #tpu.dot_dimension_numbers<[1], [1], [0], [0], [0, 0, 1, 0], [], []>} : vector<16x128xbf16>, vector<128x128xbf16>, vector<16x128xf32> -> vector<16x128xf32>
    %90 = arith.addf %89, %40 : vector<16x128xf32>
    %cst_25 = arith.constant dense<0xFF800000> : vector<16xf32>
    %91 = vector.multi_reduction <maximumf>, %90, %cst_25 [1] : vector<16x128xf32> to vector<16xf32>
    %92 = vector.shape_cast %91 : vector<16xf32> to vector<16x1xf32>
    %93 = vector.broadcast %92 : vector<16x1xf32> to vector<16x128xf32>
    %94 = arith.subf %90, %93 : vector<16x128xf32>
    %95 = math.exp %94 : vector<16x128xf32>
    %cst_26 = arith.constant dense<0.000000e+00> : vector<16x128xf32>
    %96 = tpu.matmul %95, %39, %cst_26 {dimension_numbers = #tpu.dot_dimension_numbers<[1], [0], [0], [1], [0, 0, 1, 1], [], []>} : vector<16x128xf32>, vector<128x128xf32>, vector<16x128xf32> -> vector<16x128xf32>
    %97 = arith.divf %95, %96 : vector<16x128xf32>
    %98 = arith.truncf %97 : vector<16x128xf32> to vector<16x128xbf16>
    %cst_27 = arith.constant dense<0.000000e+00> : vector<16x128xf32>
    %99 = tpu.matmul %98, %87, %cst_27 {dimension_numbers = #tpu.dot_dimension_numbers<[1], [0], [0], [1], [0, 0, 1, 1], [], []>} : vector<16x128xbf16>, vector<128x128xbf16>, vector<16x128xf32> -> vector<16x128xf32>
    %c16 = arith.constant 16 : index
    %c0_28 = arith.constant 0 : index
    %100 = vector.load %arg4[%c16, %c0_28] : memref<32x128xf32, #tpu.memory_space<vmem>>, vector<16x128xf32>
    tpu.vector_store %arg4[%c16, %c0_28], %99 {strides = array<i32>} : memref<32x128xf32, #tpu.memory_space<vmem>>, vector<16x128xf32>,
    return
  }
  func.func @transform_0(%arg0: i32) -> (i32, i32) {
    %c0_i32 = arith.constant 0 : i32
    %c0_i32_0 = arith.constant 0 : i32
    %c0_i32_1 = arith.constant 0 : i32
    return %c0_i32, %c0_i32_0 : i32, i32
  }
  func.func @transform_1(%arg0: i32) -> (i32, i32) {
    %c0_i32 = arith.constant 0 : i32
    %c0_i32_0 = arith.constant 0 : i32
    %c0_i32_1 = arith.constant 0 : i32
    return %c0_i32, %c0_i32_0 : i32, i32
  }
  func.func @transform_2(%arg0: i32) -> (i32, i32) {
    %c0_i32 = arith.constant 0 : i32
    %c0_i32_0 = arith.constant 0 : i32
    %c0_i32_1 = arith.constant 0 : i32
    return %c0_i32, %c0_i32_0 : i32, i32
  }
  func.func @transform_3(%arg0: i32) -> (i32, i32) {
    %c0_i32 = arith.constant 0 : i32
    %c0_i32_0 = arith.constant 0 : i32
    %c0_i32_1 = arith.constant 0 : i32
    return %c0_i32, %c0_i32_0 : i32, i32
  }
}

</mosaic_0001>

<bundles_post_ra>
// kernel: attention_forward.1
= control target key start
LH: loop header
LB: loop body
LE: loop exit
PB: predicated region body
PF: predicated region fallthrough
CT: control target
= control target key end

     0   :  { %v2317_v2 = vmov 0   ;;  %s2898_s0 = inlined_call_operand.vmem [shape: bf16[32,128], index: 0, kind: input, shape index: {}]   ;;  %s2899_s1 = inlined_call_operand.vmem [shape: bf16[128,384], index: 1, kind: input, shape index: {}]   ;;  %s2900_s2 = inlined_call_operand.vmem [shape: f32[16,128], index: 2, kind: input, shape index: {}]   ;;  %s2901_s3 = inlined_call_operand.hbm [shape: f32[32,128], index: 3, kind: output, shape index: {}]  }
   0x1   :  { %v2243_v0 = vld [vmem:[%s2899_s1 + $0x4] ss:$12 sps:$4 sm:$0xff]   ;;  %v2245_v1 = vld [vmem:[%s2899_s1] ss:$12 sps:$4 sm:$0xff]   ;;  %224 = vmatprep.mubr.bf16.mxu0 %v2317_v2  ;;  %v2246_v3 = vld [vmem:[%s2899_s1 + $0x1c] ss:$12 sps:$4 sm:$0xff]  }
   0x2   :  { %192 = vmatprep.subr.bf16.mxu0 %v2243_v0  ;;  %v2248_v4 = vld [vmem:[%s2899_s1 + $0x18] ss:$12 sps:$4 sm:$0xff]   ;;  %v2249_v5 = vld [vmem:[%s2899_s1 + $0x34] ss:$12 sps:$4 sm:$0xff]   ;;  %v2251_v6 = vld [vmem:[%s2899_s1 + $0x30] ss:$12 sps:$4 sm:$0xff]  }
   0x3   :  { %193 = vmatpush1.bf16.msra.mxu0 %v2245_v1  ;;  %v2252_v7 = vld [vmem:[%s2899_s1 + $0x4c] ss:$12 sps:$4 sm:$0xff]   ;;  %v2254_v8 = vld [vmem:[%s2899_s1 + $0x48] ss:$12 sps:$4 sm:$0xff]   ;;  %v2267_v9 = vld [vmem:[%s2898_s0] sm:$0xff]  }
   0x4   :  { %194 = vmatprep.subr.bf16.mxu0 %v2246_v3  ;;  %v2255_v10 = vld [vmem:[%s2899_s1 + $0x64] ss:$12 sps:$4 sm:$0xff]   ;;  %v2257_v11 = vld [vmem:[%s2899_s1 + $0x60] ss:$12 sps:$4 sm:$0xff]   ;;  %2017 = vmatprep.mubr.bf16.mxu1 %v2267_v9  ;;  %v2258_v12 = vld [vmem:[%s2899_s1 + $0x7c] ss:$12 sps:$4 sm:$0xff]  }
   0x7   :  { %195 = vmatpush1.bf16.msra.mxu0 %v2248_v4 }
   0x8   :  { %196 = vmatprep.subr.bf16.mxu0 %v2249_v5 }
   0xb   :  { %197 = vmatpush1.bf16.msra.mxu0 %v2251_v6 }
   0xc   :  { %198 = vmatprep.subr.bf16.mxu0 %v2252_v7 }
   0xf   :  { %199 = vmatpush1.bf16.msra.mxu0 %v2254_v8 }
  0x10   :  { %200 = vmatprep.subr.bf16.mxu0 %v2255_v10 }
  0x11   :  { %8 = vsyncpa [#allocation3], 0  ;;  %v2260_v13 = vld [vmem:[%s2899_s1 + $0x78] ss:$12 sps:$4 sm:$0xff]   ;;  %v2261_v14 = vld [vmem:[%s2899_s1 + $0x94] ss:$12 sps:$4 sm:$0xff]   ;;  %v294_v20 = vlaneseq }
  0x12   :  { %v2263_v15 = vld [vmem:[%s2899_s1 + $0x90] ss:$12 sps:$4 sm:$0xff]   ;;  %v2264_v16 = vld [vmem:[%s2899_s1 + $0xac] ss:$12 sps:$4 sm:$0xff]   ;;  %v2266_v17 = vld [vmem:[%s2899_s1 + $0xa8] ss:$12 sps:$4 sm:$0xff]  }
  0x13   :  { %201 = vmatpush1.bf16.msra.mxu0 %v2257_v11  ;;  %v2399_v18 = vld [vmem:[%s2898_s0 + $0x8] sm:$0xff]   ;;  %v2318_v19 = vmov 0.0   ;;  %vm2319_vm0 = vmmov 0   ;;  %v2320_v21 = vmov 1966171168   ;;  %v2405_v23 = vshrl.u32 %v294_v20, 7 }
  0x14   :  { %202 = vmatprep.subr.bf16.mxu0 %v2258_v12  ;;  %v571_v22 = vunpack.c.l.s4 %v2320_v21  ;;  %v504_v27 = vand.u32 127, %v294_v20 }
  0x15   :  { %v296_v26 = vadd.s32 8, %v2405_v23  ;;  %v315_v34 = vand.u32 7, %v2405_v23  ;;  %v2425_v39 = vsub.s32 0, %v2405_v23  ;;  %v297_v41 = vadd.s32 16, %v2405_v23 }
  0x16   :  { %v572_v24 = vunpack.c.0.s8 %v571_v22  ;;  %v2421_v36 = vand.u32 7, %v504_v27  ;;  %v298_v42 = vadd.s32 24, %v2405_v23  ;;  %v299_v59 = vadd.s32 32, %v2405_v23 }
  0x17   :  { %203 = vmatpush1.bf16.msra.mxu0 %v2260_v13  ;;  %v322_v35 = vand.u32 7, %v296_v26  ;;  %v329_v49 = vand.u32 7, %v297_v41  ;;  %v300_v60 = vadd.s32 40, %v2405_v23  ;;  %v301_v5 = vadd.s32 48, %v2405_v23 }
  0x18   :  { %204 = vmatprep.subr.bf16.mxu0 %v2261_v14  ;;  %v2408_v25 = vsub.s32 %v572_v24, %v2405_v23  ;;  %vm517_vm1 = vcmp.eq.s32.totalorder %v315_v34, %v2421_v36  ;;  %v336_v50 = vand.u32 7, %v298_v42  ;;  %v302_v7 = vadd.s32 56, %v2405_v23 }
  0x19   :  { %vm518_vm2 = vcmp.eq.s32.totalorder %v322_v35, %v2421_v36  ;;  %vm519_vm4 = vcmp.eq.s32.totalorder %v329_v49, %v2421_v36  ;;  %v350_v3 = vand.u32 7, %v300_v60  ;;  %v357_v10 = vand.u32 7, %v301_v5 }
  0x1a   :  { %vm2438_vm3 = vmpackc.low %vm518_vm2, %vm517_vm1  ;;  %vm520_vm5 = vcmp.eq.s32.totalorder %v336_v50, %v2421_v36  ;;  %v364_v14 = vand.u32 7, %v302_v7  ;;  %v304_v21 = vadd.s32 72, %v2405_v23  ;;  %v305_v35 = vadd.s32 80, %v2405_v23 }
  0x1b   :  { %205 = vmatpush1.bf16.msra.mxu0 %v2263_v15  ;;  %vm2458_vm6 = vmpackc.low %vm520_vm5, %vm519_vm4  ;;  %vm522_vm8 = vcmp.eq.s32.totalorder %v350_v3, %v2421_v36  ;;  %vm523_vm10 = vcmp.eq.s32.totalorder %v357_v10, %v2421_v36  ;;  %v309_v3 = vadd.s32 112, %v2405_v23 }
  0x1c   :  { %206 = vmatprep.subr.bf16.mxu0 %v2264_v16  ;;  %v303_v16 = vadd.s32 64, %v2405_v23  ;;  %vm524_vm11 = vcmp.eq.s32.totalorder %v364_v14, %v2421_v36 }
  0x1d   :  { %vm2488_vm12 = vmpackc.low %vm524_vm11, %vm523_vm10 }
  0x1e   :  { %v371_v26 = vand.u32 7, %v303_v16 }
  0x1f   :  { %207 = vmatpush1.bf16.msra.mxu0 %v2266_v17 }
  0x20   :  { %2021 = vmatprep.subr.bf16.mxu0 %v2318_v19  ;;  %vm525_vm13 = vcmp.eq.s32.totalorder %v371_v26, %v2421_v36 }
  0x22   :  { %225 = vmatmul.mubr.bf16.vlgmr.msra.gmra.mrb[0].mxu0 %v2267_v9 }
  0x23   :  { %234 = vmatprep.mubr.bf16.mxu0 %v2317_v2  ;;  %v343_v2 = vand.u32 7, %v299_v59 }
  0x25   :  { %vm521_vm7 = vcmp.eq.s32.totalorder %v343_v2, %v2421_v36 }
  0x26   :  { %vm2473_vm9 = vmpackc.low %vm522_vm8, %vm521_vm7 }
  0x2a   :  { %235 = vmatmul.mubr.bf16.gmra.mrb[4].mxu0 %v2399_v18 }
  0x2b   :  { %2037 = vmatprep.mubr.msk.bf16.mxu0 %vm2319_vm0, %v2318_v19 }
  0xf5   :  { %v2411_v28 = vpop.f32.mrb[0].mxu0 }
  0xf6   :  { %v228_v29 = vpop.f32.mrb[1].mxu0 }
  0xf7   :  { %v576_v30 = vrot.slane %v228_v29, %v2408_v25  ;;  %v2414_v31 = vpop.f32.mrb[2].mxu0  ;;  %v569_v43 = vcombine.high %v228_v29, %v228_v29 }
  0xf8   :  { %v975_v32 = vpack.c.bf16 %v2414_v31, %v2411_v28  ;;  %v2418_v33 = vpop.f32.mrb[3].mxu0 }
  0xf9   :  { %v584_v37 = vcombine.high %v576_v30, %v576_v30  ;;  %v592_v38 = vrot.slane %v576_v30, %v2408_v25  ;;  %v583_v52 = vrot.slane %v569_v43, %v2408_v25  ;;  %v625_v13 = vrot.slane %v2418_v33, %v2408_v25 }
  0xfa   :  { %v378_v30 = vand.u32 7, %v304_v21  ;;  %v385_v43 = vand.u32 7, %v305_v35 }
  0xfb   :  { %v606_v40 = vrot.slane %v584_v37, %v2408_v25  ;;  %v670_v46 = vrot.slane %v592_v38, %v2425_v39  ;;  %v614_v56 = vcombine.high %v592_v38, %v592_v38  ;;  %v585_v57 = vcombine.high %v583_v52, %v583_v52 }
  0xfc   :  { %v599_v4 = vrot.slane %v583_v52, %v2408_v25  ;;  %v633_v20 = vcombine.high %v625_v13, %v625_v13  ;;  %v641_v34 = vrot.slane %v625_v13, %v2408_v25  ;;  %v618_v37 = vcombine.high %v2418_v33, %v2418_v33 }
  0xfd   :  { %v674_v44 = vrot.slane %v606_v40, %v2425_v39  ;;  %v2433_v45 = vpop.f32.mrb[4].mxu0  ;;  %v616_v53 = vcombine.high %v606_v40, %v606_v40  ;;  %v678_v62 = vrot.slane %v614_v56, %v2425_v39  ;;  %v613_v0 = vrot.slane %v585_v57, %v2408_v25 }
  0xfe   :  { %v2436_v47 = vpop.f32.mrb[5].mxu0  ;;  %v686_v8 = vrot.slane %v599_v4, %v2425_v39  ;;  %v615_v15 = vcombine.high %v599_v4, %v599_v4  ;;  %v655_v29 = vrot.slane %v633_v20, %v2408_v25  ;;  %vm526_vm14 = vcmp.eq.s32.totalorder %v378_v30, %v2421_v36 }
  0xff   :  { %v2442_v51 = vpop.f32.mrb[6].mxu0  ;;  %v1792_v54 = vpack.c.bf16 %v674_v44, %v670_v46  ;;  %v682_v58 = vrot.slane %v616_v53, %v2425_v39  ;;  %v690_v6 = vrot.slane %v613_v0, %v2425_v39  ;;  %v617_v11 = vcombine.high %v613_v0, %v613_v0  ;;  %vm2505_vm15 = vmpackc.low %vm526_vm14, %vm525_vm13 }
 0x100   :  { %v2445_v55 = vpop.f32.mrb[7].mxu0  ;;  %v1558_v61 = vpack.c.bf16 %v2442_v51, %v2433_v45  ;;  %v694_v22 = vrot.slane %v615_v15, %v2425_v39  ;;  %v706_v38 = vrot.slane %v655_v29, %v2425_v39  ;;  %v306_v40 = vadd.s32 88, %v2405_v23  ;;  %v2272_v45 = vld [vmem:[%s2899_s1 + $0x50] ss:$12 sps:$4 sm:$0xff]   ;;  %v2273_v51 = vld [vmem:[%s2899_s1 + $0x68] ss:$12 sps:$4 sm:$0xff]  }
 0x101   :  { %2022 = vmatpush3.bf16.xpose.msk.msra.mxu0 %vm2438_vm3, %v1792_v54  ;;  %v1795_v1 = vpack.c.bf16 %v682_v58, %v678_v62  ;;  %v1798_v12 = vpack.c.bf16 %v690_v6, %v686_v8  ;;  %v698_v17 = vrot.slane %v617_v11, %v2425_v39  ;;  %v702_v41 = vrot.slane %v641_v34, %v2425_v39 }
 0x102   :  { %2023 = vmatprep.subr.bf16.mxu0 %v2318_v19  ;;  %v632_v44 = vrot.slane %v618_v37, %v2408_v25  ;;  %v665_v46 = vcombine.high %v655_v29, %v655_v29  ;;  %v392_v50 = vand.u32 7, %v306_v40  ;;  %v663_v52 = vcombine.high %v641_v34, %v641_v34 }
 0x103   :  { %v1801_v27 = vpack.c.bf16 %v698_v17, %v694_v22  ;;  %v1804_v49 = vpack.c.bf16 %v706_v38, %v702_v41  ;;  %vm527_vm1 = vcmp.eq.s32.totalorder %v385_v43, %v2421_v36  ;;  %v307_v33 = vadd.s32 96, %v2405_v23 }
 0x104   :  { %v634_v53 = vcombine.high %v632_v44, %v632_v44  ;;  %v714_v54 = vrot.slane %v665_v46, %v2425_v39  ;;  %vm528_vm2 = vcmp.eq.s32.totalorder %v392_v50, %v2421_v36  ;;  %v308_v56 = vadd.s32 104, %v2405_v23 }
 0x105   :  { %v710_v57 = vrot.slane %v663_v52, %v2425_v39  ;;  %vm2519_vm4 = vmpackc.low %vm528_vm2, %vm527_vm1  ;;  %v399_v59 = vand.u32 7, %v307_v33  ;;  %v310_v4 = vadd.s32 120, %v2405_v23  ;;  %v1159_v6 = vrot.slane %v2436_v47, %v2408_v25 }
 0x106   :  { %v662_v60 = vrot.slane %v634_v53, %v2408_v25  ;;  %v406_v0 = vand.u32 7, %v308_v56  ;;  %v413_v11 = vand.u32 7, %v309_v3  ;;  %v1152_v22 = vcombine.high %v2436_v47, %v2436_v47 }
 0x107   :  { %v1807_v62 = vpack.c.bf16 %v714_v54, %v710_v57  ;;  %vm529_vm5 = vcmp.eq.s32.totalorder %v399_v59, %v2421_v36  ;;  %v1167_v14 = vcombine.high %v1159_v6, %v1159_v6  ;;  %v1175_v16 = vrot.slane %v1159_v6, %v2408_v25 }
 0x108   :  { %v722_v2 = vrot.slane %v662_v60, %v2425_v39  ;;  %vm530_vm7 = vcmp.eq.s32.totalorder %v406_v0, %v2421_v36  ;;  %v666_v8 = vcombine.high %v662_v60, %v662_v60  ;;  %vm531_vm10 = vcmp.eq.s32.totalorder %v413_v11, %v2421_v36 }
 0x109   :  { %2024 = vmatpush3.bf16.xpose.msk.msra.mxu0 %vm2458_vm6, %v1795_v1  ;;  %v648_v1 = vrot.slane %v632_v44, %v2408_v25  ;;  %vm2536_vm8 = vmpackc.low %vm530_vm7, %vm529_vm5  ;;  %v1189_v17 = vrot.slane %v1167_v14, %v2408_v25  ;;  %v1253_v26 = vrot.slane %v1175_v16, %v2425_v39  ;;  %v1197_v29 = vcombine.high %v1175_v16, %v1175_v16  ;;  %v2269_v16 = vld [vmem:[%s2899_s1 + $0x8] ss:$12 sps:$4 sm:$0xff]  }
 0x10a   :  { %2025 = vmatprep.subr.bf16.mxu0 %v2318_v19  ;;  %v730_v23 = vrot.slane %v666_v8, %v2425_v39  ;;  %v1208_v46 = vrot.slane %v2445_v55, %v2408_v25  ;;  %v1201_v56 = vcombine.high %v2445_v55, %v2445_v55  ;;  %2001 = vmatprep.subr.bf16.mxu1 %v2269_v16 }
 0x10b   :  { %v718_v5 = vrot.slane %v648_v1, %v2425_v39  ;;  %v664_v13 = vcombine.high %v648_v1, %v648_v1  ;;  %v1199_v30 = vcombine.high %v1189_v17, %v1189_v17  ;;  %v1261_v47 = vrot.slane %v1197_v29, %v2425_v39  ;;  %2002 = vmatpush3.bf16.msra.mxu1 %v2269_v16 }
 0x10c   :  { %v1216_v52 = vcombine.high %v1208_v46, %v1208_v46  ;;  %v1224_v53 = vrot.slane %v1208_v46, %v2408_v25  ;;  %v1215_v60 = vrot.slane %v1201_v56, %v2408_v25 }
 0x10d   :  { %v1810_v10 = vpack.c.bf16 %v722_v2, %v718_v5  ;;  %v726_v15 = vrot.slane %v664_v13, %v2425_v39  ;;  %v1265_v37 = vrot.slane %v1199_v30, %v2425_v39 }
 0x10e   :  { %v1238_v54 = vrot.slane %v1216_v52, %v2408_v25  ;;  %v1285_v57 = vrot.slane %v1224_v53, %v2425_v39  ;;  %v1217_v2 = vcombine.high %v1215_v60, %v1215_v60  ;;  %v1231_v55 = vrot.slane %v1215_v60, %v2408_v25 }
 0x10f   :  { %v1813_v21 = vpack.c.bf16 %v730_v23, %v726_v15  ;;  %v1859_v41 = vpack.c.bf16 %v1265_v37, %v1261_v47 }
 0x110   :  { %v1289_v59 = vrot.slane %v1238_v54, %v2425_v39  ;;  %v1248_v0 = vcombine.high %v1238_v54, %v1238_v54  ;;  %v1245_v5 = vrot.slane %v1217_v2, %v2408_v25  ;;  %v1301_v8 = vrot.slane %v1231_v55, %v2425_v39 }
 0x111   :  { %2026 = vmatpush3.bf16.xpose.msk.msra.mxu0 %vm2473_vm9, %v1798_v12  ;;  %v420_v12 = vand.u32 7, %v310_v4  ;;  %v1247_v11 = vcombine.high %v1231_v55, %v1231_v55 }
 0x112   :  { %2027 = vmatprep.subr.bf16.mxu0 %v2318_v19  ;;  %v1868_v1 = vpack.c.bf16 %v1289_v59, %v1285_v57  ;;  %v1297_v4 = vrot.slane %v1248_v0, %v2425_v39 }
 0x113   :  { %vm532_vm11 = vcmp.eq.s32.totalorder %v420_v12, %v2421_v36  ;;  %v1166_v36 = vrot.slane %v1152_v22, %v2408_v25  ;;  %v1249_v12 = vcombine.high %v1245_v5, %v1245_v5  ;;  %v1309_v14 = vrot.slane %v1247_v11, %v2425_v39  ;;  %v2275_v22 = vld [vmem:[%s2899_s1 + $0x98] ss:$12 sps:$4 sm:$0xff]  }
 0x114   :  { %vm2549_vm13 = vmpackc.low %vm532_vm11, %vm531_vm10 }
 0x115   :  { %v1168_v35 = vcombine.high %v1166_v36, %v1166_v36  ;;  %v1182_v38 = vrot.slane %v1166_v36, %v2408_v25  ;;  %v1313_v23 = vrot.slane %v1249_v12, %v2425_v39 }
 0x117   :  { %v1196_v40 = vrot.slane %v1168_v35, %v2408_v25  ;;  %v1269_v28 = vrot.slane %v1182_v38, %v2425_v39  ;;  %v1877_v15 = vpack.c.bf16 %v1313_v23, %v1309_v14 }
 0x119   :  { %2028 = vmatpush3.bf16.xpose.msk.msra.mxu0 %vm2488_vm12, %v1801_v27  ;;  %v1257_v27 = vrot.slane %v1189_v17, %v2425_v39  ;;  %v1273_v31 = vrot.slane %v1196_v40, %v2425_v39  ;;  %v1200_v43 = vcombine.high %v1196_v40, %v1196_v40  ;;  %v2270_v17 = vld [vmem:[%s2899_s1 + $0x20] ss:$12 sps:$4 sm:$0xff]  }
 0x11a   :  { %2029 = vmatprep.subr.bf16.mxu0 %v2318_v19  ;;  %2003 = vmatprep.subr.bf16.mxu1 %v2270_v17 }
 0x11b   :  { %v1856_v34 = vpack.c.bf16 %v1257_v27, %v1253_v26  ;;  %v1862_v44 = vpack.c.bf16 %v1273_v31, %v1269_v28  ;;  %v1281_v50 = vrot.slane %v1200_v43, %v2425_v39  ;;  %2004 = vmatpush3.bf16.msra.mxu1 %v2270_v17  ;;  %v2276_v26 = vld [vmem:[%s2899_s1 + $0xb0] ss:$12 sps:$4 sm:$0xff]   ;;  %v2321_v27 = vmov 1.0|1.0  }
 0x121   :  { %2030 = vmatpush3.bf16.xpose.msk.msra.mxu0 %vm2505_vm15, %v1804_v49 }
 0x122   :  { %2031 = vmatprep.subr.bf16.mxu0 %v2318_v19 }
 0x129   :  { %2032 = vmatpush3.bf16.xpose.msk.msra.mxu0 %vm2519_vm4, %v1807_v62  ;;  %v1246_v62 = vcombine.high %v1224_v53, %v1224_v53 }
 0x12a   :  { %2033 = vmatprep.subr.bf16.mxu0 %v2318_v19 }
 0x12b   :  { %v1293_v3 = vrot.slane %v1246_v62, %v2425_v39 }
 0x12d   :  { %v1871_v6 = vpack.c.bf16 %v1297_v4, %v1293_v3 }
 0x131   :  { %2034 = vmatpush3.bf16.xpose.msk.msra.mxu0 %vm2536_vm8, %v1810_v10  ;;  %v1305_v10 = vrot.slane %v1245_v5, %v2425_v39 }
 0x132   :  { %2035 = vmatprep.subr.bf16.mxu0 %v2318_v19 }
 0x133   :  { %v1874_v13 = vpack.c.bf16 %v1305_v10, %v1301_v8 }
 0x139   :  { %2036 = vmatpush3.bf16.xpose.msk.msra.mxu0 %vm2549_vm13, %v1813_v21  ;;  %v2271_v21 = vld [vmem:[%s2899_s1 + $0x38] ss:$12 sps:$4 sm:$0xff]  }
 0x13a   :  { %2096 = vmatprep.subr.bf16.mxu0 %v2318_v19  ;;  %2005 = vmatprep.subr.bf16.mxu1 %v2271_v21 }
 0x13b   :  { %2006 = vmatpush3.bf16.msra.mxu1 %v2271_v21 }
 0x13c   :  { %2007 = vmatprep.subr.bf16.mxu1 %v2272_v45 }
 0x13f   :  { %2008 = vmatpush3.bf16.msra.mxu1 %v2272_v45 }
 0x140   :  { %2038 = vmatmul.mubr.bf16.vlgmr.msra.gmra.mrb[8].mxu0 %v975_v32  ;;  %v1198_v32 = vcombine.high %v1182_v38, %v1182_v38  ;;  %2009 = vmatprep.subr.bf16.mxu1 %v2273_v51 }
 0x141   :  { %2097 = vmatpush3.bf16.xpose.msk.msra.mxu0 %vm2438_vm3, %v1856_v34  ;;  %2112 = vmatprep.mubr.msk.bf16.mxu0 %vm2319_vm0, %v2318_v19  ;;  %v566_v34 = vld [vmem:[%s2900_s2 + $0x8] sm:$0xff] }
 0x142   :  { %2098 = vmatprep.subr.bf16.mxu0 %v2318_v19  ;;  %v1277_v49 = vrot.slane %v1198_v32, %v2425_v39 }
 0x143   :  { %2010 = vmatpush3.bf16.msra.mxu1 %v2273_v51 }
 0x144   :  { %v1865_v33 = vpack.c.bf16 %v1281_v50, %v1277_v49 }
 0x149   :  { %2099 = vmatpush3.bf16.xpose.msk.msra.mxu0 %vm2458_vm6, %v1859_v41 }
 0x14a   :  { %2100 = vmatprep.subr.bf16.mxu0 %v2318_v19 }
 0x151   :  { %2101 = vmatpush3.bf16.xpose.msk.msra.mxu0 %vm2473_vm9, %v1862_v44 }
 0x152   :  { %2102 = vmatprep.subr.bf16.mxu0 %v2318_v19 }
 0x159   :  { %2103 = vmatpush3.bf16.xpose.msk.msra.mxu0 %vm2488_vm12, %v1865_v33 }
 0x15a   :  { %2104 = vmatprep.subr.bf16.mxu0 %v2318_v19 }
 0x161   :  { %2105 = vmatpush3.bf16.xpose.msk.msra.mxu0 %vm2505_vm15, %v1868_v1 }
 0x162   :  { %2106 = vmatprep.subr.bf16.mxu0 %v2318_v19 }
 0x169   :  { %2107 = vmatpush3.bf16.xpose.msk.msra.mxu0 %vm2519_vm4, %v1871_v6 }
 0x16a   :  { %2108 = vmatprep.subr.bf16.mxu0 %v2318_v19 }
 0x171   :  { %2109 = vmatpush3.bf16.xpose.msk.msra.mxu0 %vm2536_vm8, %v1874_v13 }
 0x172   :  { %2110 = vmatprep.subr.bf16.mxu0 %v2318_v19 }
 0x179   :  { %2111 = vmatpush3.bf16.xpose.msk.msra.mxu0 %vm2549_vm13, %v1877_v15 }
 0x180   :  { %2113 = vmatmul.mubr.bf16.vlgmr.msra.gmra.mrb[12].mxu0 %v1558_v61  ;;  %v2274_v61 = vld [vmem:[%s2899_s1 + $0x80] ss:$12 sps:$4 sm:$0xff]  }
 0x181   :  { %2011 = vmatprep.subr.bf16.mxu1 %v2274_v61 }
 0x182   :  { %2012 = vmatpush3.bf16.msra.mxu1 %v2274_v61 }
 0x183   :  { %2013 = vmatprep.subr.bf16.mxu1 %v2275_v22 }
 0x186   :  { %2014 = vmatpush3.bf16.msra.mxu1 %v2275_v22 }
 0x187   :  { %2015 = vmatprep.subr.bf16.mxu1 %v2276_v26 }
 0x18a   :  { %2016 = vmatpush3.bf16.msra.mxu1 %v2276_v26 }
 0x18b   :  { %2172 = vmatprep.subr.msk.bf16.mxu1 %vm2438_vm3, %v2321_v27 }
 0x18d   :  { %2018 = vmatmul.mubr.bf16.vlgmr.msra.gmra.mrb[0].mxu1 %v2399_v18  ;;  %v565_v18 = vld [vmem:[%s2900_s2] sm:$0xff]  ;;  %s2322_s2 = smov [#allocation2]  }
 0x18e   :  { %2174 = vmatpush3.bf16.msk.msra.mxu1 %vm2438_vm3, %v2321_v27  ;;  %s1738_s12 = sshll.u32 %s2322_s2, 4  ;;  %s1739_s12 = int_to_ptr.vmem [resolvable:$true] %s1738_s12 }
 0x18f   :  { %2176 = vmatprep.subr.msk.bf16.mxu1 %vm2458_vm6, %v2321_v27  ;;  %s2293_s13 = scalar_lea.vmem %s1739_s12, 512  ;;  %p2298_p1 = scmp.lt.s32.totalorder %s1739_s12, %s1739_s12 }
 0x190   :  { %p2294_p0 = scmp.ne.s32.totalorder %s1739_s12, %s2293_s13  ;;  %p2299_p2 = scmp.lt.s32.totalorder %s2293_s13, %s2293_s13 }
 0x192   :  { %2178 = vmatpush3.bf16.msk.msra.mxu1 %vm2458_vm6, %v2321_v27  ;;  %p2300_p3 = por %p2299_p2, %p2298_p1 }
 0x193   :  { %2180 = vmatprep.subr.msk.bf16.mxu1 %vm2473_vm9, %v2321_v27 }
 0x194   :  { %p2301_p4 = pnand %p2300_p3, %p2294_p0 }
 0x196   :  { %2182 = vmatpush3.bf16.msk.msra.mxu1 %vm2473_vm9, %v2321_v27 }
 0x197   :  { %2184 = vmatprep.subr.msk.bf16.mxu1 %vm2488_vm12, %v2321_v27 }
 0x19a   :  { %2186 = vmatpush3.bf16.msk.msra.mxu1 %vm2488_vm12, %v2321_v27 }
 0x19b   :  { %2188 = vmatprep.subr.msk.bf16.mxu1 %vm2505_vm15, %v2321_v27 }
 0x19e   :  { %2190 = vmatpush3.bf16.msk.msra.mxu1 %vm2505_vm15, %v2321_v27 }
 0x19f   :  { %2192 = vmatprep.subr.msk.bf16.mxu1 %vm2519_vm4, %v2321_v27 }
 0x1a2   :  { %2194 = vmatpush3.bf16.msk.msra.mxu1 %vm2519_vm4, %v2321_v27 }
 0x1a3   :  { %2196 = vmatprep.subr.msk.bf16.mxu1 %vm2536_vm8, %v2321_v27 }
 0x1a6   :  { %2198 = vmatpush3.bf16.msk.msra.mxu1 %vm2536_vm8, %v2321_v27 }
 0x1a7   :  { %2200 = vmatprep.subr.msk.bf16.mxu1 %vm2549_vm13, %v2321_v27 }
 0x1aa   :  { %2202 = vmatpush3.bf16.msk.msra.mxu1 %vm2549_vm13, %v2321_v27 }
 0x1ab   :  { %2076 = vmatprep.subr.bf16.mxu1 %v2318_v19 }
 0x213   :  { %v1010_v36 = vpop.f32.mrb[8].mxu0 }
 0x214   :  { %v1011_v29 = vadd.f32 %v1010_v36, %v565_v18  ;;  %v2039_v30 = vpop.f32.mrb[9].mxu0 }
 0x215   :  { %v1013_v35 = vpop.f32.mrb[10].mxu0 }
 0x216   :  { %1017 = vmax.xlane.f32.xlu0 %v1011_v29  ;;  %v2040_v47 = vpop.f32.mrb[11].mxu0  ;;  %v1014_v37 = vadd.f32 %v1013_v35, %v566_v34 }
 0x21a   :  { %1019 = vmax.xlane.f32.xlu0 %v1014_v37 }
 0x253   :  { %v1593_v38 = vpop.f32.mrb[12].mxu0 }
 0x254   :  { %v2697_v40 = vadd.f32 %v1593_v38, %v565_v18  ;;  %v2114_v41 = vpop.f32.mrb[13].mxu0 }
 0x255   :  { %v1596_v28 = vpop.f32.mrb[14].mxu0 }
 0x256   :  { %1600 = vmax.xlane.f32.xlu1 %v2697_v40  ;;  %v2700_v31 = vadd.f32 %v1596_v28, %v566_v34  ;;  %v2115_v32 = vpop.f32.mrb[15].mxu0 }
 0x25a   :  { %1602 = vmax.xlane.f32.xlu1 %v2700_v31 }
 0x260   :  { %v2711_v54 = vpop.f32.mrb[0].mxu1 }
 0x261   :  { %v279_v56 = vpop.f32.mrb[1].mxu1 }
 0x262   :  { %v773_v57 = vcombine.high %v279_v56, %v279_v56  ;;  %v780_v59 = vrot.slane %v279_v56, %v2408_v25  ;;  %v2714_v60 = vpop.f32.mrb[2].mxu1 }
 0x263   :  { %v282_v62 = vpop.f32.mrb[3].mxu1 }
 0x264   :  { %v787_v0 = vrot.slane %v773_v57, %v2408_v25  ;;  %v788_v1 = vcombine.high %v780_v59, %v780_v59  ;;  %v796_v2 = vrot.slane %v780_v59, %v2408_v25  ;;  %v822_v16 = vcombine.high %v282_v62, %v282_v62 }
 0x265   :  { %v829_v51 = vrot.slane %v282_v62, %v2408_v25 }
 0x266   :  { %v789_v3 = vcombine.high %v787_v0, %v787_v0  ;;  %v810_v4 = vrot.slane %v788_v1, %v2408_v25  ;;  %v818_v55 = vcombine.high %v796_v2, %v796_v2  ;;  %v803_v6 = vrot.slane %v787_v0, %v2408_v25 }
 0x267   :  { %v874_v8 = vrot.slane %v796_v2, %v2425_v39  ;;  %v836_v26 = vrot.slane %v822_v16, %v2408_v25  ;;  %v837_v18 = vcombine.high %v829_v51, %v829_v51 }
 0x268   :  { %v820_v5 = vcombine.high %v810_v4, %v810_v4  ;;  %v817_v10 = vrot.slane %v789_v3, %v2408_v25  ;;  %v878_v11 = vrot.slane %v810_v4, %v2425_v39  ;;  %v882_v12 = vrot.slane %v818_v55, %v2425_v39 }
 0x269   :  { %v819_v23 = vcombine.high %v803_v6, %v803_v6  ;;  %v890_v17 = vrot.slane %v803_v6, %v2425_v39  ;;  %v859_v30 = vrot.slane %v837_v18, %v2408_v25  ;;  %v838_v35 = vcombine.high %v836_v26, %v836_v26 }
 0x26a   :  { %v886_v13 = vrot.slane %v820_v5, %v2425_v39  ;;  %v1832_v14 = vpack.c.bf16 %v878_v11, %v874_v8  ;;  %v821_v15 = vcombine.high %v817_v10, %v817_v10  ;;  %v894_v21 = vrot.slane %v817_v10, %v2425_v39 }
 0x26b   :  { %v898_v61 = vrot.slane %v819_v23, %v2425_v39  ;;  %v910_v41 = vrot.slane %v859_v30, %v2425_v39  ;;  %v852_v28 = vrot.slane %v836_v26, %v2408_v25  ;;  %v866_v32 = vrot.slane %v838_v35, %v2408_v25 }
 0x26c   :  { %v1835_v45 = vpack.c.bf16 %v886_v13, %v882_v12  ;;  %v902_v22 = vrot.slane %v821_v15, %v2425_v39  ;;  %v1838_v36 = vpack.c.bf16 %v894_v21, %v890_v17  ;;  %v1356_v23 = vcombine.high %v2711_v54, %v2711_v54 }
 0x26d   :  { %v926_v56 = vrot.slane %v866_v32, %v2425_v39 }
 0x26e   :  { %v1841_v34 = vpack.c.bf16 %v902_v22, %v898_v61  ;;  %v1370_v15 = vrot.slane %v1356_v23, %v2408_v25 }
 0x270   :  { %v1372_v17 = vcombine.high %v1370_v15, %v1370_v15  ;;  %v1386_v22 = vrot.slane %v1370_v15, %v2408_v25 }
 0x272   :  { %v1400_v26 = vrot.slane %v1372_v17, %v2408_v25 }
 0x274   :  { %v1404_v35 = vcombine.high %v1400_v26, %v1400_v26 }
 0x2a3   :  { %v1018_v43 = vpop.xlane.xlu0 %1017 }
 0x2a4   :  { %v1021_v44 = vsub.f32 %v1011_v29, %v1018_v43  ;;  %v845_v29 = vrot.slane %v829_v51, %v2408_v25 }
 0x2a6   :  { %v1023_v46 = vmul.f32 1.442695, %v1021_v44  ;;  %v867_v47 = vcombine.high %v845_v29, %v845_v29  ;;  %v906_v38 = vrot.slane %v845_v29, %v2425_v39 }
 0x2a7   :  { %v1020_v49 = vpop.xlane.xlu0 %1019 }
 0x2a8   :  { %2277 = vpow2.f32 %v1023_v46  ;;  %v1022_v50 = vsub.f32 %v1014_v37, %v1020_v49  ;;  %v869_v37 = vcombine.high %v859_v30, %v859_v30  ;;  %v914_v43 = vrot.slane %v867_v47, %v2425_v39 }
 0x2a9   :  { %v1844_v46 = vpack.c.bf16 %v910_v41, %v906_v38  ;;  %v868_v49 = vcombine.high %v852_v28, %v852_v28  ;;  %v1405_v47 = vcombine.high %v2714_v60, %v2714_v60  ;;  %v1477_v38 = vrot.slane %v1400_v26, %v2425_v39 }
 0x2aa   :  { %v1025_v52 = vmul.f32 1.442695, %v1022_v50  ;;  %v918_v44 = vrot.slane %v869_v37, %v2425_v39  ;;  %v870_v50 = vcombine.high %v866_v32, %v866_v32  ;;  %v1473_v37 = vrot.slane %v1386_v22, %v2425_v39 }
 0x2ab   :  { %v930_v59 = vrot.slane %v868_v49, %v2425_v39  ;;  %v1485_v32 = vrot.slane %v1404_v35, %v2425_v39 }
 0x2ac   :  { %2279 = vpow2.f32 %v1025_v52  ;;  %v922_v52 = vrot.slane %v852_v28, %v2425_v39  ;;  %v1847_v57 = vpack.c.bf16 %v918_v44, %v914_v43  ;;  %v934_v62 = vrot.slane %v870_v50, %v2425_v39 }
 0x2ad   :  { %v1419_v43 = vrot.slane %v1405_v47, %v2408_v25 }
 0x2ae   :  { %v1850_v0 = vpack.c.bf16 %v926_v56, %v922_v52  ;;  %v1853_v1 = vpack.c.bf16 %v934_v62, %v930_v59 }
 0x2af   :  { %v1421_v50 = vcombine.high %v1419_v43, %v1419_v43  ;;  %v1435_v59 = vrot.slane %v1419_v43, %v2408_v25 }
 0x2b1   :  { %v1449_v9 = vrot.slane %v1421_v50, %v2408_v25  ;;  %v1505_v24 = vrot.slane %v1435_v59, %v2425_v39 }
 0x2b2   :  { %v2703_v33 = vpop.eup %2277 }
 0x2b3   :  { %2073 = vmatprep.mubr.f32.mxu1 %v2703_v33 }
 0x2b6   :  { %v2706_v53 = vpop.eup %2279 }
 0x2b7   :  { %2074 = vmatmul.mubr.f32.vlgmr.msra.gmra.mrb[4].mxu1 %v2706_v53 }
 0x2b8   :  { %2092 = vmatprep.mubr.msk.bf16.mxu1 %vm2319_vm0, %v2318_v19  ;;  %2077 = vmatpush3.bf16.msk.msra.mxu1 %vm2438_vm3, %v1832_v14 }
 0x2b9   :  { %2078 = vmatprep.subr.bf16.mxu1 %v2318_v19 }
 0x2bc   :  { %2079 = vmatpush3.bf16.msk.msra.mxu1 %vm2458_vm6, %v1835_v45 }
 0x2bd   :  { %2080 = vmatprep.subr.bf16.mxu1 %v2318_v19 }
 0x2c0   :  { %2081 = vmatpush3.bf16.msk.msra.mxu1 %vm2473_vm9, %v1838_v36 }
 0x2c1   :  { %2082 = vmatprep.subr.bf16.mxu1 %v2318_v19 }
 0x2c4   :  { %2083 = vmatpush3.bf16.msk.msra.mxu1 %vm2488_vm12, %v1841_v34  ;;  %v1412_v34 = vrot.slane %v2714_v60, %v2408_v25  ;;  %v1902_v60 = vpack.c.bf16 %v1477_v38, %v1473_v37 }
 0x2c5   :  { %2084 = vmatprep.subr.bf16.mxu1 %v2318_v19 }
 0x2c6   :  { %v1420_v28 = vcombine.high %v1412_v34, %v1412_v34  ;;  %v1428_v44 = vrot.slane %v1412_v34, %v2408_v25 }
 0x2c8   :  { %2085 = vmatpush3.bf16.msk.msra.mxu1 %vm2505_vm15, %v1844_v46  ;;  %v1442_v46 = vrot.slane %v1420_v28, %v2408_v25  ;;  %v1450_v63 = vcombine.high %v1428_v44, %v1428_v44  ;;  %v1489_v56 = vrot.slane %v1428_v44, %v2425_v39 }
 0x2c9   :  { %2086 = vmatprep.subr.bf16.mxu1 %v2318_v19 }
 0x2ca   :  { %v1452_v52 = vcombine.high %v1442_v46, %v1442_v46  ;;  %v1497_v62 = vrot.slane %v1450_v63, %v2425_v39 }
 0x2cc   :  { %2087 = vmatpush3.bf16.msk.msra.mxu1 %vm2519_vm4, %v1847_v57  ;;  %v1493_v57 = vrot.slane %v1442_v46, %v2425_v39 }
 0x2cd   :  { %2088 = vmatprep.subr.bf16.mxu1 %v2318_v19 }
 0x2d0   :  { %2089 = vmatpush3.bf16.msk.msra.mxu1 %vm2536_vm8, %v1850_v0  ;;  %v1501_v0 = vrot.slane %v1452_v52, %v2425_v39 }
 0x2d1   :  { %2090 = vmatprep.subr.bf16.mxu1 %v2318_v19 }
 0x2d4   :  { %2091 = vmatpush3.bf16.msk.msra.mxu1 %vm2549_vm13, %v1853_v1  ;;  %v1908_v1 = vpack.c.bf16 %v1493_v57, %v1489_v56 }
 0x2d5   :  { %2204 = vmatprep.subr.msk.bf16.mxu1 %vm2438_vm3, %v2321_v27 }
 0x2e3   :  { %v1601_v2 = vpop.xlane.xlu1 %1600 }
 0x2e4   :  { %v1604_v3 = vsub.f32 %v2697_v40, %v1601_v2  ;;  %v1451_v2 = vcombine.high %v1435_v59, %v1435_v59 }
 0x2e6   :  { %v1606_v5 = vmul.f32 1.442695, %v1604_v3  ;;  %v1453_v3 = vcombine.high %v1449_v9, %v1449_v9 }
 0x2e7   :  { %v1603_v40 = vpop.xlane.xlu1 %1602 }
 0x38a   :  { %v2075_v4 = vpop.f32.mrb[4].mxu1 }
 0x38b   :  { %2281 = vrcp.f32 %v2075_v4  ;;  %v1093_v55 = vpop.f32.mrb[5].mxu1  ;;  %v1509_v4 = vrot.slane %v1449_v9, %v2425_v39 }
 0x38c   :  { %2283 = vrcp.f32 %v1093_v55  ;;  %v1911_v55 = vpack.c.bf16 %v1501_v0, %v1497_v62 }
 0x38d   :  { %2285 = vpow2.f32 %v1606_v5  ;;  %v1517_v5 = vrot.slane %v1453_v3, %v2425_v39  ;;  %v1914_v42 = vpack.c.bf16 %v1509_v4, %v1505_v24 }
 0x395   :  { %v2282_v6 = vpop.eup %2281 }
 0x396   :  { %v2284_v8 = vpop.eup %2283  ;;  %v1105_v10 = vmul.f32 %v2282_v6, %v2706_v53  ;;  %v1363_v53 = vrot.slane %v2711_v54, %v2408_v25 }
 0x397   :  { %v1103_v11 = vmul.f32 %v2284_v8, %v2703_v33  ;;  %v2772_v13 = vpop.eup %2285  ;;  %v1605_v33 = vsub.f32 %v2700_v31, %v1603_v40 }
 0x398   :  { %v1371_v31 = vcombine.high %v1363_v53, %v1363_v53  ;;  %v1379_v16 = vrot.slane %v1363_v53, %v2408_v25 }
 0x399   :  { %v1106_v12 = vpack.c.bf16 %v1105_v10, %v1103_v11  ;;  %v1608_v14 = vmul.f32 1.442695, %v1605_v33 }
 0x39a   :  { %v1393_v54 = vrot.slane %v1371_v31, %v2408_v25  ;;  %v1401_v21 = vcombine.high %v1379_v16, %v1379_v16  ;;  %v1457_v51 = vrot.slane %v1379_v16, %v2425_v39  ;;  %v1513_v25 = vrot.slane %v1451_v2, %v2425_v39 }
 0x39b   :  { %2093 = vmatmul.mubr.bf16.vlgmr.msra.gmra.mrb[8].mxu1 %v1106_v12  ;;  %2287 = vpow2.f32 %v1608_v14 }
 0x39c   :  { %2206 = vmatpush3.bf16.msk.msra.mxu1 %vm2438_vm3, %v2321_v27  ;;  %2148 = vmatprep.mubr.f32.mxu1 %v2772_v13  ;;  %v1403_v45 = vcombine.high %v1393_v54, %v1393_v54  ;;  %v1461_v61 = vrot.slane %v1393_v54, %v2425_v39  ;;  %v1465_v36 = vrot.slane %v1401_v21, %v2425_v39 }
 0x39d   :  { %2208 = vmatprep.subr.msk.bf16.mxu1 %vm2458_vm6, %v2321_v27  ;;  %v1917_v6 = vpack.c.bf16 %v1517_v5, %v1513_v25 }
 0x39e   :  { %v1469_v29 = vrot.slane %v1403_v45, %v2425_v39  ;;  %v1896_v30 = vpack.c.bf16 %v1461_v61, %v1457_v51 }
 0x3a0   :  { %2210 = vmatpush3.bf16.msk.msra.mxu1 %vm2458_vm6, %v2321_v27  ;;  %v1899_v41 = vpack.c.bf16 %v1469_v29, %v1465_v36 }
 0x3a1   :  { %2212 = vmatprep.subr.msk.bf16.mxu1 %vm2473_vm9, %v2321_v27 }
 0x3a4   :  { %2214 = vmatpush3.bf16.msk.msra.mxu1 %vm2473_vm9, %v2321_v27 }
 0x3a5   :  { %2216 = vmatprep.subr.msk.bf16.mxu1 %vm2488_vm12, %v2321_v27  ;;  %v2833_v18 = vpop.eup %2287 }
 0x3a8   :  { %2218 = vmatpush3.bf16.msk.msra.mxu1 %vm2488_vm12, %v2321_v27 }
 0x3a9   :  { %2220 = vmatprep.subr.msk.bf16.mxu1 %vm2505_vm15, %v2321_v27 }
 0x3ac   :  { %2222 = vmatpush3.bf16.msk.msra.mxu1 %vm2505_vm15, %v2321_v27 }
 0x3ad   :  { %2224 = vmatprep.subr.msk.bf16.mxu1 %vm2519_vm4, %v2321_v27 }
 0x3b0   :  { %2226 = vmatpush3.bf16.msk.msra.mxu1 %vm2519_vm4, %v2321_v27 }
 0x3b1   :  { %2228 = vmatprep.subr.msk.bf16.mxu1 %vm2536_vm8, %v2321_v27 }
 0x3b4   :  { %2230 = vmatpush3.bf16.msk.msra.mxu1 %vm2536_vm8, %v2321_v27 }
 0x3b5   :  { %2232 = vmatprep.subr.msk.bf16.mxu1 %vm2549_vm13, %v2321_v27 }
 0x3b8   :  { %2234 = vmatpush3.bf16.msk.msra.mxu1 %vm2549_vm13, %v2321_v27  ;;  %v1402_v27 = vcombine.high %v1386_v22, %v1386_v22 }
 0x3b9   :  { %2151 = vmatprep.subr.bf16.mxu1 %v2318_v19 }
 0x3ba   :  { %v1481_v48 = vrot.slane %v1402_v27, %v2425_v39 }
 0x3bb   :  { %2149 = vmatmul.mubr.f32.vlgmr.msra.gmra.mrb[6].mxu1 %v2833_v18 }
 0x3bc   :  { %2152 = vmatpush3.bf16.msk.msra.mxu1 %vm2438_vm3, %v1896_v30  ;;  %2167 = vmatprep.mubr.msk.bf16.mxu1 %vm2319_vm0, %v2318_v19  ;;  %v1905_v49 = vpack.c.bf16 %v1485_v32, %v1481_v48 }
 0x3bd   :  { %2153 = vmatprep.subr.bf16.mxu1 %v2318_v19 }
 0x3c0   :  { %2154 = vmatpush3.bf16.msk.msra.mxu1 %vm2458_vm6, %v1899_v41 }
 0x3c1   :  { %2155 = vmatprep.subr.bf16.mxu1 %v2318_v19 }
 0x3c4   :  { %2156 = vmatpush3.bf16.msk.msra.mxu1 %vm2473_vm9, %v1902_v60 }
 0x3c5   :  { %2157 = vmatprep.subr.bf16.mxu1 %v2318_v19 }
 0x3c8   :  { %2158 = vmatpush3.bf16.msk.msra.mxu1 %vm2488_vm12, %v1905_v49 }
 0x3c9   :  { %2159 = vmatprep.subr.bf16.mxu1 %v2318_v19 }
 0x3cc   :  { %2160 = vmatpush3.bf16.msk.msra.mxu1 %vm2505_vm15, %v1908_v1 }
 0x3cd   :  { %2161 = vmatprep.subr.bf16.mxu1 %v2318_v19 }
 0x3d0   :  { %2162 = vmatpush3.bf16.msk.msra.mxu1 %vm2519_vm4, %v1911_v55 }
 0x3d1   :  { %2163 = vmatprep.subr.bf16.mxu1 %v2318_v19 }
 0x3d4   :  { %2164 = vmatpush3.bf16.msk.msra.mxu1 %vm2536_vm8, %v1914_v42 }
 0x3d5   :  { %2165 = vmatprep.subr.bf16.mxu1 %v2318_v19 }
 0x3d8   :  { %2166 = vmatpush3.bf16.msk.msra.mxu1 %vm2549_vm13, %v1917_v6 }
 0x46e   :  { %v1141_v8 = vpop.f32.mrb[8].mxu1 }
 0x46f   :  { %1148 = vst [vmem:[#allocation2] sm:$0xff] %v1141_v8  ;;  %v2094_v58 = vpop.f32.mrb[9].mxu1 }
 0x470   :  { %v1144_v10 = vpop.f32.mrb[10].mxu1 }
 0x471   :  { %1149 = vst [vmem:[#allocation2 + $0x8] sm:$0xff] %v1144_v10  ;;  %v2095_v11 = vpop.f32.mrb[11].mxu1 }
 0x48e   :  { %v2150_v12 = vpop.f32.mrb[6].mxu1 }
 0x48f   :  { %2289 = vrcp.f32 %v2150_v12  ;;  %v1676_v40 = vpop.f32.mrb[7].mxu1 }
 0x490   :  { %2291 = vrcp.f32 %v1676_v40 }
 0x499   :  { %v2290_v39 = vpop.eup %2289 }
 0x49a   :  { %v2292_v33 = vpop.eup %2291  ;;  %v1688_v7 = vmul.f32 %v2290_v39, %v2833_v18 }
 0x49b   :  { %v1686_v19 = vmul.f32 %v2292_v33, %v2772_v13 }
 0x49d   :  { %v1689_v53 = vpack.c.bf16 %v1688_v7, %v1686_v19 }
 0x49f   :  { %2168 = vmatmul.mubr.bf16.vlgmr.msra.gmra.mrb[12].mxu1 %v1689_v53 }
 0x572   :  { %v1724_v20 = vpop.f32.mrb[12].mxu1 }
 0x573   :  { %1731 = vst [vmem:[#allocation2 + $0x10] sm:$0xff] %v1724_v20  ;;  %v2169_v14 = vpop.f32.mrb[13].mxu1 }
 0x574   :  { %v1727_v23 = vpop.f32.mrb[14].mxu1 }
 0x575   :  { %1732 = vst [vmem:[#allocation2 + $0x18] sm:$0xff] %v1727_v23  ;;  %v2170_v31 = vpop.f32.mrb[15].mxu1 }
 0x576   :  { %2304 = shalt.err (!%p2301_p4)
}
 0x577   :  { %s2305_s16 = scalar_lea.hbm %s2901_s3, 512 }
 0x578   :  { %p2306_p5 = scmp.ne.s32.totalorder %s2901_s3, %s2305_s16  ;;  %p2309_p6 = scmp.lt.u32.totalorder %s2305_s16, %s2901_s3 }
 0x57a   :  { %p2311_p7 = pnand %p2309_p6, %p2306_p5 }
 0x57c   :  { %2314 = shalt.err (!%p2311_p7)
}
 0x57d   :  { %s2323_s0 = smov 128   ;;  %s2324_s21 = smov 8  }
 0x57e   :  { %1744 = dma.vmem_to_hbm [thread:$0]  %s1739_s12, 512, %s2901_s3, [#allocation3], %s2323_s0, %s2323_s0, %s2324_s21  }
 0x57f   :  { %2315 = dma.done.wait [#allocation3], 512  }
 0x580   :  { %2316 = vsyncadd [#allocation3], 4294966784 }
 0x581   :  { %1748 = vsyncpa [#allocation3], 1 }

</bundles_post_ra>
